<compile_context>
chip_gen: v6e
topology: v6e:2x2x1
jax: 0.10.0
libtpu: 0.0.40
codegen_flags: <defaults>
</compile_context>

<pallas_src>
import jax
import jax.numpy as jnp
from jax import lax
from jax.experimental import pallas as pl
from jax.experimental.pallas import tpu as pltpu


def _round_up(x, m):
    return (x + m - 1) // m * m


# ------------------------------ Pallas kernel --------------------------------

def gat_fused_kernel(idx_ref, nh_ref, w1_ref, b1_ref, w2_ref, b2_ref, o_ref):
    # idx_ref : [2, E] int32 (row 0 = src, row 1 = dst; padded entries are -1)
    # nh_ref  : [N, Din] f32 ; w/b refs: MLP params ; o_ref: [N, Dout] f32
    N = o_ref.shape[0]
    E = idx_ref.shape[1]

    # ---- nf_lin: Linear -> ReLU -> Linear (dropout=0.0 -> identity), f32 on MXU ----
    h = jnp.dot(nh_ref[...], w1_ref[...], preferred_element_type=jnp.float32) + b1_ref[...]
    h = jnp.maximum(h, 0.0)
    n_h = jnp.dot(h, w2_ref[...], preferred_element_type=jnp.float32) + b2_ref[...]   # [N, D]

    # ---- node-major one-hots: nodes on sublanes, edges on lanes ----
    idx = idx_ref[...]
    src = idx[0:1, :]                                              # [1, E]
    dst = idx[1:2, :]                                              # [1, E]
    node_iota = lax.broadcasted_iota(jnp.int32, (N, E), 0)
    src_oh = src == node_iota                                      # [N, E] bool
    dst_oh = dst == node_iota                                      # [N, E] bool

    src_oh_bf = src_oh.astype(jnp.bfloat16)
    dst_oh_f32 = dst_oh.astype(jnp.float32)
    n_h_bf = n_h.astype(jnp.bfloat16)

    # gather: src_nh[e, :] = n_h[src[e], :]   ==  src_oh^T @ n_h   (bf16 MXU, f32 acc)
    src_nh = lax.dot_general(src_oh_bf, n_h_bf, (((0,), (0,)), ((), ())),
                             preferred_element_type=jnp.float32)   # [E, D]

    # scores[n, e] = n_h[n, :] . src_nh[e, :]  (== attn[e] exactly where n == dst[e])
    scores = lax.dot_general(n_h_bf, src_nh.astype(jnp.bfloat16),
                             (((1,), (1,)), ((), ())),
                             preferred_element_type=jnp.float32)   # [N, E]

    # scatter_softmax over edges sharing the same dst == masked row-softmax (f32)
    s_masked = jnp.where(dst_oh, scores, jnp.float32(-1e30))       # [N, E]
    m = jnp.max(s_masked, axis=1, keepdims=True)                   # [N, 1]
    p = jnp.exp(s_masked - m) * dst_oh_f32                         # [N, E], 0 off-edges
    denom = jnp.sum(p, axis=1, keepdims=True)                      # [N, 1]

    # scatter_add with post-scatter normalization: nz = (P @ src_nh) / denom
    nz_unnorm = jnp.dot(p.astype(jnp.bfloat16), src_nh.astype(jnp.bfloat16),
                        preferred_element_type=jnp.float32)        # [N, D]
    safe_denom = jnp.where(denom > 0.0, denom, 1.0)
    inv_denom = jnp.where(denom > 0.0,
                          pl.reciprocal(safe_denom, approx=True),  # EUP
                          0.0)                                     # zero in-degree guard
    nz = nz_unnorm * inv_denom

    # residual
    o_ref[...] = (n_h + nz).astype(o_ref.dtype)


# ------------------------------ JAX wrapper -----------------------------------

def gat_layer_forward(nh, eh, edge_index, params):
    """Returns (n_h, e_h) exactly like GATlayer.forward."""
    w1, b1, w2, b2 = params
    N, D_in = nh.shape
    H = w1.shape[1]
    D_out = w2.shape[1]
    E = edge_index.shape[1]

    # lane-dense padding: features/edges -> x128, nodes -> x8
    N_p = _round_up(N, 8)
    E_p = _round_up(max(E, 1), 128)
    Din_p = _round_up(D_in, 128)
    H_p = _round_up(H, 128)
    Dout_p = _round_up(D_out, 128)

    nh_p = jnp.zeros((N_p, Din_p), jnp.float32).at[:N, :D_in].set(nh)
    w1_p = jnp.zeros((Din_p, H_p), jnp.float32).at[:D_in, :H].set(w1)
    b1_p = jnp.zeros((1, H_p), jnp.float32).at[:, :H].set(jnp.reshape(b1, (1, -1)))
    w2_p = jnp.zeros((H_p, Dout_p), jnp.float32).at[:H, :D_out].set(w2)
    b2_p = jnp.zeros((1, Dout_p), jnp.float32).at[:, :D_out].set(jnp.reshape(b2, (1, -1)))
    idx_p = jnp.full((2, E_p), -1, jnp.int32).at[:, :E].set(edge_index.astype(jnp.int32))

    vmem = pl.BlockSpec(memory_space=pltpu.MemorySpace.VMEM)

    n_h_p = pl.pallas_call(
        gat_fused_kernel,
        out_shape=jax.ShapeDtypeStruct((N_p, Dout_p), jnp.float32),
        in_specs=[vmem] * 6,
        out_specs=vmem,
    )(idx_p, nh_p, w1_p, b1_p, w2_p, b2_p)

    return n_h_p[:N, :D_out], eh  # e_h passes through unchanged


# ------------------------------- reference ------------------------------------

def reference(nh, eh, edge_index, params):
    w1, b1, w2, b2 = params
    n_h = jnp.maximum(nh @ w1 + b1, 0.0) @ w2 + b2
    src, dst = edge_index
    src_nh, dst_nh = n_h[src], n_h[dst]
    attn = jnp.sum(src_nh * dst_nh, axis=-1)
    N = nh.shape[0]
    maxes = jax.ops.segment_max(attn, dst, num_segments=N)
    attn_exp = jnp.exp(attn - maxes[dst])
    denom = jax.ops.segment_sum(attn_exp, dst, num_segments=N)
    attn_norm = attn_exp / denom[dst]
    nz = jax.ops.segment_sum(attn_norm[:, None] * src_nh, dst, num_segments=N)
    return n_h + nz, eh


# ---------------------------------- main ---------------------------------------

if __name__ == "__main__":
    key = jax.random.PRNGKey(0)
    N, E = 16, 64
    input_dim, hidden_dim, output_dim = 8, 32, 32
    edge_dim = 8

    k1, k2, k3, k4, k5, k6, k7 = jax.random.split(key, 7)
    nh = jax.random.normal(k1, (N, input_dim), jnp.float32)
    eh = jax.random.normal(k2, (E, edge_dim), jnp.float32)
    src_i = jax.random.randint(k3, (E,), 0, N, jnp.int32)
    dst_i = jax.random.randint(k4, (E,), 0, N, jnp.int32)
    edge_index = jnp.stack([src_i, dst_i], axis=0)

    # deterministic synthetic parameters for nf_lin (2-layer MLP, bias=True)
    w1 = jax.random.normal(k5, (input_dim, hidden_dim), jnp.float32) * 0.1
    b1 = jax.random.normal(k6, (1, hidden_dim), jnp.float32) * 0.01
    w2 = jax.random.normal(k7, (hidden_dim, output_dim), jnp.float32) * 0.1
    b2 = jnp.zeros((1, output_dim), jnp.float32)
    params = (w1, b1, w2, b2)

    n_h_out, e_h_out = gat_layer_forward(nh, eh, edge_index, params)
    jax.block_until_ready((n_h_out, e_h_out))

    n_h_ref, e_h_ref = reference(nh, eh, edge_index, params)
    # bf16 MXU operands + approx reciprocal -> slightly looser tolerance than pure f32
    assert jnp.allclose(n_h_out, n_h_ref, atol=1e-2, rtol=1e-2), "node feature mismatch"
    assert jnp.allclose(e_h_out, e_h_ref), "edge feature mismatch"

    print("KERNEL_OK")
</pallas_src>

<mosaic_0001>
module attributes {stable_mosaic.version = 11 : i64} {
  func.func @gat_fused_kernel(%arg0: memref<2x128xi32, #tpu.memory_space<vmem>>, %arg1: memref<16x128xf32, #tpu.memory_space<vmem>>, %arg2: memref<128x128xf32, #tpu.memory_space<vmem>>, %arg3: memref<1x128xf32, #tpu.memory_space<vmem>>, %arg4: memref<128x128xf32, #tpu.memory_space<vmem>>, %arg5: memref<1x128xf32, #tpu.memory_space<vmem>>, %arg6: memref<16x128xf32, #tpu.memory_space<vmem>>) attributes {dimension_semantics = [], scalar_prefetch = 0 : i64, scratch_operands = 0 : i64, tpu.core_type = #tpu.core_type<tc>} {
    %c0 = arith.constant 0 : index
    %c0_0 = arith.constant 0 : index
    %0 = vector.load %arg1[%c0, %c0_0] : memref<16x128xf32, #tpu.memory_space<vmem>>, vector<16x128xf32>
    %c0_1 = arith.constant 0 : index
    %c0_2 = arith.constant 0 : index
    %1 = vector.load %arg2[%c0_1, %c0_2] : memref<128x128xf32, #tpu.memory_space<vmem>>, vector<128x128xf32>
    %cst = arith.constant dense<0.000000e+00> : vector<16x128xf32>
    %2 = tpu.matmul %0, %1, %cst {dimension_numbers = #tpu.dot_dimension_numbers<[1], [0], [0], [1], [0, 0, 1, 1], [], []>} : vector<16x128xf32>, vector<128x128xf32>, vector<16x128xf32> -> vector<16x128xf32>
    %c0_3 = arith.constant 0 : index
    %c0_4 = arith.constant 0 : index
    %3 = vector.load %arg3[%c0_3, %c0_4] : memref<1x128xf32, #tpu.memory_space<vmem>>, vector<1x128xf32>
    %4 = vector.broadcast %3 : vector<1x128xf32> to vector<16x128xf32>
    %5 = arith.addf %2, %4 : vector<16x128xf32>
    %cst_5 = arith.constant 0.000000e+00 : f32
    %6 = vector.broadcast %cst_5 : f32 to vector<16x128xf32>
    %7 = arith.maximumf %5, %6 : vector<16x128xf32>
    %c0_6 = arith.constant 0 : index
    %c0_7 = arith.constant 0 : index
    %8 = vector.load %arg4[%c0_6, %c0_7] : memref<128x128xf32, #tpu.memory_space<vmem>>, vector<128x128xf32>
    %cst_8 = arith.constant dense<0.000000e+00> : vector<16x128xf32>
    %9 = tpu.matmul %7, %8, %cst_8 {dimension_numbers = #tpu.dot_dimension_numbers<[1], [0], [0], [1], [0, 0, 1, 1], [], []>} : vector<16x128xf32>, vector<128x128xf32>, vector<16x128xf32> -> vector<16x128xf32>
    %c0_9 = arith.constant 0 : index
    %c0_10 = arith.constant 0 : index
    %10 = vector.load %arg5[%c0_9, %c0_10] : memref<1x128xf32, #tpu.memory_space<vmem>>, vector<1x128xf32>
    %11 = vector.broadcast %10 : vector<1x128xf32> to vector<16x128xf32>
    %12 = arith.addf %9, %11 : vector<16x128xf32>
    %c0_11 = arith.constant 0 : index
    %c0_12 = arith.constant 0 : index
    %13 = vector.load %arg0[%c0_11, %c0_12] : memref<2x128xi32, #tpu.memory_space<vmem>>, vector<2x128xi32>
    %14 = vector.extract_strided_slice %13 {offsets = [0, 0], sizes = [1, 128], strides = [1, 1]} : vector<2x128xi32> to vector<1x128xi32>
    %15 = vector.extract_strided_slice %13 {offsets = [1, 0], sizes = [1, 128], strides = [1, 1]} : vector<2x128xi32> to vector<1x128xi32>
    %16 = tpu.iota {dimensions = array<i32: 0>} : vector<16x128xi32>
    %17 = vector.broadcast %14 : vector<1x128xi32> to vector<16x128xi32>
    %18 = arith.cmpi eq, %17, %16 : vector<16x128xi32>
    %19 = vector.broadcast %15 : vector<1x128xi32> to vector<16x128xi32>
    %20 = arith.cmpi eq, %19, %16 : vector<16x128xi32>
    %21 = arith.extui %18 : vector<16x128xi1> to vector<16x128xi32>
    %22 = arith.sitofp %21 : vector<16x128xi32> to vector<16x128xf32>
    %23 = arith.truncf %22 : vector<16x128xf32> to vector<16x128xbf16>
    %24 = arith.extui %20 : vector<16x128xi1> to vector<16x128xi32>
    %25 = arith.sitofp %24 : vector<16x128xi32> to vector<16x128xf32>
    %26 = arith.truncf %12 : vector<16x128xf32> to vector<16x128xbf16>
    %cst_13 = arith.constant dense<0.000000e+00> : vector<128x128xf32>
    %27 = tpu.matmul %23, %26, %cst_13 {dimension_numbers = #tpu.dot_dimension_numbers<[0], [0], [1], [1], [0, 1, 1, 1], [], []>} : vector<16x128xbf16>, vector<16x128xbf16>, vector<128x128xf32> -> vector<128x128xf32>
    %28 = arith.truncf %27 : vector<128x128xf32> to vector<128x128xbf16>
    %cst_14 = arith.constant dense<0.000000e+00> : vector<16x128xf32>
    %29 = tpu.matmul %26, %28, %cst_14 {dimension_numbers = #tpu.dot_dimension_numbers<[1], [1], [0], [0], [0, 0, 1, 0], [], []>} : vector<16x128xbf16>, vector<128x128xbf16>, vector<16x128xf32> -> vector<16x128xf32>
    %cst_15 = arith.constant -1.000000e+30 : f32
    %30 = vector.broadcast %cst_15 : f32 to vector<16x128xf32>
    %31 = arith.select %20, %29, %30 : vector<16x128xi1>, vector<16x128xf32>
    %cst_16 = arith.constant dense<0xFF800000> : vector<16xf32>
    %32 = vector.multi_reduction <maximumf>, %31, %cst_16 [1] : vector<16x128xf32> to vector<16xf32>
    %33 = vector.shape_cast %32 : vector<16xf32> to vector<16x1xf32>
    %34 = vector.broadcast %33 : vector<16x1xf32> to vector<16x128xf32>
    %35 = arith.subf %31, %34 : vector<16x128xf32>
    %36 = math.exp %35 : vector<16x128xf32>
    %37 = arith.mulf %36, %25 : vector<16x128xf32>
    %cst_17 = arith.constant dense<0.000000e+00> : vector<16xf32>
    %38 = vector.multi_reduction <add>, %37, %cst_17 [1] : vector<16x128xf32> to vector<16xf32>
    %39 = vector.shape_cast %38 : vector<16xf32> to vector<16x1xf32>
    %40 = arith.truncf %37 : vector<16x128xf32> to vector<16x128xbf16>
    %41 = arith.truncf %27 : vector<128x128xf32> to vector<128x128xbf16>
    %cst_18 = arith.constant dense<0.000000e+00> : vector<16x128xf32>
    %42 = tpu.matmul %40, %41, %cst_18 {dimension_numbers = #tpu.dot_dimension_numbers<[1], [0], [0], [1], [0, 0, 1, 1], [], []>} : vector<16x128xbf16>, vector<128x128xbf16>, vector<16x128xf32> -> vector<16x128xf32>
    %cst_19 = arith.constant 0.000000e+00 : f32
    %43 = vector.broadcast %cst_19 : f32 to vector<16x1xf32>
    %44 = arith.cmpf ogt, %39, %43 : vector<16x1xf32>
    %cst_20 = arith.constant 1.000000e+00 : f32
    %45 = vector.broadcast %cst_20 : f32 to vector<16x1xf32>
    %46 = arith.select %44, %39, %45 : vector<16x1xi1>, vector<16x1xf32>
    %cst_21 = arith.constant 0.000000e+00 : f32
    %47 = vector.broadcast %cst_21 : f32 to vector<16x1xf32>
    %48 = arith.cmpf ogt, %39, %47 : vector<16x1xf32>
    %49 = tpu.reciprocal %46 {approx = true} : vector<16x1xf32> -> vector<16x1xf32>
    %cst_22 = arith.constant 0.000000e+00 : f32
    %50 = vector.broadcast %cst_22 : f32 to vector<16x1xf32>
    %51 = arith.select %48, %49, %50 : vector<16x1xi1>, vector<16x1xf32>
    %52 = vector.broadcast %51 : vector<16x1xf32> to vector<16x128xf32>
    %53 = arith.mulf %42, %52 : vector<16x128xf32>
    %54 = arith.addf %12, %53 : vector<16x128xf32>
    %c0_23 = arith.constant 0 : index
    %c0_24 = arith.constant 0 : index
    %55 = vector.load %arg6[%c0_23, %c0_24] : memref<16x128xf32, #tpu.memory_space<vmem>>, vector<16x128xf32>
    tpu.vector_store %arg6[%c0_23, %c0_24], %54 {strides = array<i32>} : memref<16x128xf32, #tpu.memory_space<vmem>>, vector<16x128xf32>,
    return
  }
}

</mosaic_0001>

<bundles_post_ra>
// kernel: tpu_custom_call.1
= control target key start
LH: loop header
LB: loop body
LE: loop exit
PB: predicated region body
PF: predicated region fallthrough
CT: control target
= control target key end

     0   :  { %11 = vsyncpa [#allocation3], 0  ;;  %s1058_s0 = inlined_call_operand.hbm [shape: s32[2,128], index: 0, kind: input, shape index: {}]   ;;  %s1059_s1 = inlined_call_operand.hbm [shape: f32[16,128], index: 1, kind: input, shape index: {}]   ;;  %s1060_s2 = inlined_call_operand.hbm [shape: f32[128,128], index: 2, kind: input, shape index: {}]   ;;  %s1061_s3 = inlined_call_operand.vmem [shape: f32[1,128], index: 3, kind: input, shape index: {}]   ;;  %s1062_s4 = inlined_call_operand.hbm [shape: f32[128,128], index: 4, kind: input, shape index: {}]   ;;  %s1063_s5 = inlined_call_operand.vmem [shape: f32[1,128], index: 5, kind: input, shape index: {}]   ;;  %s1064_s6 = inlined_call_operand.hbm [shape: f32[16,128], index: 6, kind: output, shape index: {}]  }
   0x1   :  { %12 = vsyncpa [#allocation6], 0 }
   0x2   :  { %13 = vsyncpa [#allocation9], 0 }
   0x3   :  { %14 = vsyncpa [#allocation4], 0  ;;  %s915_s21 = smov [#allocation5]  }
   0x4   :  { %s30_s22 = sshll.u32 %s915_s21, 4  ;;  %s31_s22 = int_to_ptr.vmem [resolvable:$true] %s30_s22 }
   0x5   :  { %s815_s23 = scalar_lea.vmem %s31_s22, 256  ;;  %p820_p1 = scmp.lt.s32.totalorder %s31_s22, %s31_s22 }
   0x6   :  { %p816_p0 = scmp.ne.s32.totalorder %s31_s22, %s815_s23  ;;  %p821_p2 = scmp.lt.s32.totalorder %s815_s23, %s815_s23 }
   0x8   :  { %p822_p3 = por %p821_p2, %p820_p1 }
   0xa   :  { %p823_p4 = pnand %p822_p3, %p816_p0 }
   0xc   :  { %826 = shalt.err (!%p823_p4)
}
   0xd   :  { %s916_s24 = smov 128   ;;  %s917_s25 = smov 8  }
   0xe   :  { %36 = dma.hbm_to_vmem [thread:$0]  %s1059_s1, 256, %s31_s22, [#allocation6], %s916_s24, %s916_s24, %s917_s25  }
   0xf   :  { %s918_s28 = smov [#allocation2]   ;;  %s919_s30 = smov [#allocation7]  }
  0x10   :  { %s21_s29 = sshll.u32 %s918_s28, 4  ;;  %s42_s7 = sshll.u32 %s919_s30, 4  ;;  %s22_s29 = int_to_ptr.vmem [resolvable:$true] %s21_s29  ;;  %s43_s7 = int_to_ptr.vmem [resolvable:$true] %s42_s7 }
  0x11   :  { %s835_s8 = scalar_lea.vmem %s22_s29, 32  ;;  %p840_p6 = scmp.lt.s32.totalorder %s22_s29, %s22_s29 }
  0x12   :  { %p836_p5 = scmp.ne.s32.totalorder %s22_s29, %s835_s8  ;;  %p841_p7 = scmp.lt.s32.totalorder %s835_s8, %s835_s8 }
  0x14   :  { %p842_p8 = por %p841_p7, %p840_p6 }
  0x16   :  { %p843_p9 = pnand %p842_p8, %p836_p5 }
  0x18   :  { %846 = shalt.err (!%p843_p9)
}
  0x19   :  { %24 = dma.hbm_to_vmem [thread:$0]  %s1058_s0, 32, %s22_s29, [#allocation3]  }
  0x1a   :  { %s855_s11 = scalar_lea.vmem %s43_s7, 2048  ;;  %p860_p11 = scmp.lt.s32.totalorder %s43_s7, %s43_s7 }
  0x1b   :  { %p856_p10 = scmp.ne.s32.totalorder %s43_s7, %s855_s11  ;;  %p861_p12 = scmp.lt.s32.totalorder %s855_s11, %s855_s11 }
  0x1d   :  { %p862_p13 = por %p861_p12, %p860_p11 }
  0x1f   :  { %p863_p0 = pnand %p862_p13, %p856_p10 }
  0x21   :  { %866 = shalt.err (!%p863_p0)
}
  0x22   :  { %48 = dma.hbm_to_vmem [thread:$0]  %s1060_s2, 2048, %s43_s7, [#allocation6], %s916_s24, %s916_s24, %s917_s25  }
  0x23   :  { %s920_s13 = smov [#allocation8]  }
  0x24   :  { %s56_s14 = sshll.u32 %s920_s13, 4  ;;  %s57_s14 = int_to_ptr.vmem [resolvable:$true] %s56_s14 }
  0x25   :  { %s875_s15 = scalar_lea.vmem %s57_s14, 2048  ;;  %p880_p2 = scmp.lt.s32.totalorder %s57_s14, %s57_s14 }
  0x26   :  { %p876_p1 = scmp.ne.s32.totalorder %s57_s14, %s875_s15  ;;  %p881_p3 = scmp.lt.s32.totalorder %s875_s15, %s875_s15 }
  0x28   :  { %p882_p4 = por %p881_p3, %p880_p2 }
  0x2a   :  { %p883_p5 = pnand %p882_p4, %p876_p1 }
  0x2c   :  { %886 = shalt.err (!%p883_p5)
}
  0x2d   :  { %62 = dma.hbm_to_vmem [thread:$0]  %s1062_s4, 2048, %s57_s14, [#allocation9], %s916_s24, %s916_s24, %s917_s25  }
  0x2e   :  { %907 = dma.done.wait [#allocation3], 32  }
  0x2f   :  { %908 = vsyncadd [#allocation3], 4294967264 }
  0x30   :  { %909 = dma.done.wait [#allocation6], 2304  }
  0x31   :  { %910 = vsyncadd [#allocation6], 4294964992 }
  0x32   :  { %911 = dma.done.wait [#allocation9], 2048  }
  0x33   :  { %912 = vsyncadd [#allocation9], 4294965248  ;;  %v95_v0 = vld [vmem:[#allocation7 + $0x78] sm:$0xff]  ;;  %v94_v1 = vld [vmem:[#allocation7 + $0x70] sm:$0xff]  ;;  %v279_v34 = vlaneseq  ;;  %v921_v35 = vmov 0.0   ;;  %vm320_vm2 = vcmask 130048  }
  0x34   :  { %661 = vmatprep.subr.mxu0 %v95_v0  ;;  %v93_v2 = vld [vmem:[#allocation7 + $0x68] sm:$0xff]  ;;  %v92_v3 = vld [vmem:[#allocation7 + $0x60] sm:$0xff]  ;;  %v78_v4 = vld [vmem:[#allocation5] sm:$0xff]  ;;  %vm922_vm3 = vmmov 0  }
  0x35   :  { %662 = vmatpush3.msra.mxu0 %v95_v0  ;;  %v91_v5 = vld [vmem:[#allocation7 + $0x58] sm:$0xff]  ;;  %693 = vmatprep.mubr.f32.mxu0 %v78_v4  ;;  %v194_v7 = vld [vmem:[#allocation8 + $0x70] sm:$0xff]  ;;  %v193_v9 = vld [vmem:[#allocation8 + $0x68] sm:$0xff]  ;;  %v981_v36 = vshrl.u32 %v279_v34, 7 }
  0x36   :  { %663 = vmatprep.subr.mxu0 %v94_v1  ;;  %v195_v6 = vld [vmem:[#allocation8 + $0x78] sm:$0xff]  ;;  %v90_v8 = vld [vmem:[#allocation7 + $0x50] sm:$0xff]  ;;  %v89_v10 = vld [vmem:[#allocation7 + $0x48] sm:$0xff] }
  0x37   :  { %664 = vmatpush3.msra.mxu0 %v94_v1  ;;  %696 = vmatprep.subr.mxu1 %v195_v6  ;;  %v192_v11 = vld [vmem:[#allocation8 + $0x60] sm:$0xff]  ;;  %v191_v13 = vld [vmem:[#allocation8 + $0x58] sm:$0xff]  ;;  %v190_v15 = vld [vmem:[#allocation8 + $0x50] sm:$0xff]  ;;  %v986_v38 = vadd.s32 8, %v981_v36  ;;  %v284_v39 = vsub.s32 0, %v981_v36 }
  0x38   :  { %665 = vmatprep.subr.mxu0 %v93_v2  ;;  %697 = vmatpush3.msra.mxu1 %v195_v6  ;;  %v88_v12 = vld [vmem:[#allocation7 + $0x40] sm:$0xff]  ;;  %v87_v14 = vld [vmem:[#allocation7 + $0x38] sm:$0xff]  ;;  %v86_v16 = vld [vmem:[#allocation7 + $0x30] sm:$0xff] }
  0x39   :  { %666 = vmatpush3.msra.mxu0 %v93_v2  ;;  %698 = vmatprep.subr.mxu1 %v194_v7  ;;  %v189_v17 = vld [vmem:[#allocation8 + $0x48] sm:$0xff]  ;;  %v188_v19 = vld [vmem:[#allocation8 + $0x40] sm:$0xff]  ;;  %v187_v21 = vld [vmem:[#allocation8 + $0x38] sm:$0xff] }
  0x3a   :  { %667 = vmatprep.subr.mxu0 %v92_v3  ;;  %699 = vmatpush3.msra.mxu1 %v194_v7  ;;  %v85_v18 = vld [vmem:[#allocation7 + $0x28] sm:$0xff]  ;;  %v84_v20 = vld [vmem:[#allocation7 + $0x20] sm:$0xff]  ;;  %v83_v22 = vld [vmem:[#allocation7 + $0x18] sm:$0xff] }
  0x3b   :  { %668 = vmatpush3.msra.mxu0 %v92_v3  ;;  %700 = vmatprep.subr.mxu1 %v193_v9  ;;  %v186_v23 = vld [vmem:[#allocation8 + $0x30] sm:$0xff]  ;;  %v185_v25 = vld [vmem:[#allocation8 + $0x28] sm:$0xff]  ;;  %v184_v27 = vld [vmem:[#allocation8 + $0x20] sm:$0xff] }
  0x3c   :  { %669 = vmatprep.subr.mxu0 %v91_v5  ;;  %701 = vmatpush3.msra.mxu1 %v193_v9  ;;  %v82_v24 = vld [vmem:[#allocation7 + $0x10] sm:$0xff]  ;;  %v81_v26 = vld [vmem:[#allocation7 + $0x8] sm:$0xff]  ;;  %v80_v28 = vld [vmem:[#allocation7] sm:$0xff] }
  0x3d   :  { %670 = vmatpush3.msra.mxu0 %v91_v5  ;;  %702 = vmatprep.subr.mxu1 %v192_v11  ;;  %v79_v29 = vld [vmem:[#allocation5 + $0x8] sm:$0xff]  ;;  %v182_v31 = vld [vmem:[#allocation8 + $0x10] sm:$0xff]  ;;  %v181_v32 = vld [vmem:[#allocation8 + $0x8] sm:$0xff] }
  0x3e   :  { %671 = vmatprep.subr.mxu0 %v90_v8  ;;  %703 = vmatpush3.msra.mxu1 %v192_v11  ;;  %v183_v30 = vld [vmem:[#allocation8 + $0x18] sm:$0xff]  ;;  %v180_v33 = vld [vmem:[#allocation8] sm:$0xff]  ;;  %v983_v37 = vld [vmem:[#allocation2] sm:$0x3] }
  0x3f   :  { %672 = vmatpush3.msra.mxu0 %v90_v8  ;;  %704 = vmatprep.subr.mxu1 %v191_v13  ;;  %v285_v40 = vrot.slane %v983_v37, %v284_v39  ;;  %v584_v44 = vld [vmem:[%s1061_s3] ss:$0 sm:$0xff]  ;;  %s923_s3 = smov [#allocation10]  }
  0x40   :  { %673 = vmatprep.subr.mxu0 %v89_v10  ;;  %705 = vmatpush3.msra.mxu1 %v191_v13  ;;  %v585_v54 = vld [vmem:[%s1063_s5] ss:$0 sm:$0xff]  ;;  %s570_s5 = sshll.u32 %s923_s3, 4  ;;  %s571_s5 = int_to_ptr.vmem [resolvable:$true] %s570_s5 }
  0x41   :  { %674 = vmatpush3.msra.mxu0 %v89_v10  ;;  %706 = vmatprep.subr.mxu1 %v190_v15  ;;  %vm286_vm0 = vcmp.eq.s32.totalorder %v285_v40, %v981_v36  ;;  %vm287_vm1 = vcmp.eq.s32.totalorder %v285_v40, %v986_v38  ;;  %s887_s19 = scalar_lea.vmem %s571_s5, 256  ;;  %p892_p7 = scmp.lt.s32.totalorder %s571_s5, %s571_s5 }
  0x42   :  { %675 = vmatprep.subr.mxu0 %v88_v12  ;;  %707 = vmatpush3.msra.mxu1 %v190_v15  ;;  %v586_v41 = vsel %vm286_vm0, 1.0, %v921_v35  ;;  %v587_v42 = vsel %vm287_vm1, 1.0, %v921_v35  ;;  %p888_p6 = scmp.ne.s32.totalorder %s571_s5, %s887_s19  ;;  %p893_p8 = scmp.lt.s32.totalorder %s887_s19, %s887_s19 }
  0x43   :  { %676 = vmatpush3.msra.mxu0 %v88_v12  ;;  %708 = vmatprep.subr.mxu1 %v189_v17  ;;  %v298_v43 = vpack.c.bf16 %v587_v42, %v586_v41 }
  0x44   :  { %677 = vmatprep.subr.mxu0 %v87_v14  ;;  %709 = vmatpush3.msra.mxu1 %v189_v17  ;;  %p894_p9 = por %p893_p8, %p892_p7 }
  0x45   :  { %678 = vmatpush3.msra.mxu0 %v87_v14  ;;  %710 = vmatprep.subr.mxu1 %v188_v19 }
  0x46   :  { %679 = vmatprep.subr.mxu0 %v86_v16  ;;  %711 = vmatpush3.msra.mxu1 %v188_v19  ;;  %p895_p10 = pnand %p894_p9, %p888_p6 }
  0x47   :  { %680 = vmatpush3.msra.mxu0 %v86_v16  ;;  %712 = vmatprep.subr.mxu1 %v187_v21 }
  0x48   :  { %681 = vmatprep.subr.mxu0 %v85_v18  ;;  %713 = vmatpush3.msra.mxu1 %v187_v21 }
  0x49   :  { %682 = vmatpush3.msra.mxu0 %v85_v18  ;;  %714 = vmatprep.subr.mxu1 %v186_v23 }
  0x4a   :  { %683 = vmatprep.subr.mxu0 %v84_v20  ;;  %715 = vmatpush3.msra.mxu1 %v186_v23 }
  0x4b   :  { %684 = vmatpush3.msra.mxu0 %v84_v20  ;;  %716 = vmatprep.subr.mxu1 %v185_v25 }
  0x4c   :  { %685 = vmatprep.subr.mxu0 %v83_v22  ;;  %717 = vmatpush3.msra.mxu1 %v185_v25  ;;  %v290_v25 = vsub.s32 1, %v981_v36 }
  0x4d   :  { %686 = vmatpush3.msra.mxu0 %v83_v22  ;;  %718 = vmatprep.subr.mxu1 %v184_v27 }
  0x4e   :  { %687 = vmatprep.subr.mxu0 %v82_v24  ;;  %719 = vmatpush3.msra.mxu1 %v184_v27 }
  0x4f   :  { %688 = vmatpush3.msra.mxu0 %v82_v24  ;;  %720 = vmatprep.subr.mxu1 %v183_v30 }
  0x50   :  { %689 = vmatprep.subr.mxu0 %v81_v26  ;;  %721 = vmatpush3.msra.mxu1 %v183_v30 }
  0x51   :  { %690 = vmatpush3.msra.mxu0 %v81_v26  ;;  %722 = vmatprep.subr.mxu1 %v182_v31  ;;  %v291_v26 = vrot.slane %v983_v37, %v290_v25 }
  0x52   :  { %691 = vmatprep.subr.mxu0 %v80_v28  ;;  %723 = vmatpush3.msra.mxu1 %v182_v31 }
  0x53   :  { %692 = vmatpush3.msra.mxu0 %v80_v28  ;;  %724 = vmatprep.subr.mxu1 %v181_v32  ;;  %vm292_vm4 = vcmp.eq.s32.totalorder %v291_v26, %v981_v36  ;;  %vm293_vm5 = vcmp.eq.s32.totalorder %v291_v26, %v986_v38 }
  0x54   :  { %694 = vmatmul.mubr.f32.vlgmr.msra.gmra.mxu0 %v79_v29  ;;  %725 = vmatpush3.msra.mxu1 %v181_v32  ;;  %v588_v42 = vsel %vm292_vm4, 1.0, %v921_v35 }
  0x55   :  { %726 = vmatprep.subr.mxu1 %v180_v33  ;;  %304 = vxpose.xlu0.c.b16.start.end [1/1] (short) %v298_v43, 128 }
  0x56   :  { %727 = vmatpush3.msra.mxu1 %v180_v33 }
  0x57   :  { %749 = vmatprep.subr.bf16.mxu1 %v921_v35 }
  0xb7   :  { %v312_v51 = vpop.trf.xlu0 }
  0xb8   :  { %733 = vmatprep.mubr.msk.bf16.mxu0 %vm320_vm2, %v312_v51 }
  0xbb   :  { %v313_v52 = vpop.trf.xlu0 }
  0xbf   :  { %v314_v55 = vpop.trf.xlu0 }
  0xc3   :  { %v315_v60 = vpop.trf.xlu0 }
  0xc7   :  { %v316_v61 = vpop.trf.xlu0 }
  0xcb   :  { %v317_v62 = vpop.trf.xlu0 }
  0xcf   :  { %v318_v63 = vpop.trf.xlu0 }
  0xd3   :  { %v319_v0 = vpop.trf.xlu0 }
 0x114   :  { %v695_v45 = vpop.f32.mrf.mxu0 }
 0x115   :  { %v175_v46 = vadd.f32 %v695_v45, %v584_v44  ;;  %v589_v45 = vsel %vm293_vm5, 1.0, %v921_v35 }
 0x116   :  { %v169_v47 = vpop.f32.mrf.mxu0 }
 0x117   :  { %v170_v48 = vadd.f32 %v584_v44, %v169_v47  ;;  %v179_v50 = vmax.f32 %v175_v46, 0.0 }
 0x119   :  { %v178_v49 = vmax.f32 %v170_v48, 0.0 }
 0x11b   :  { %728 = vmatprep.mubr.f32.mxu1 %v178_v49 }
 0x11c   :  { %729 = vmatmul.mubr.f32.vlgmr.msra.gmra.mxu1 %v179_v50 }
 0x11d   :  { %765 = vmatprep.mubr.msk.bf16.mxu1 %vm922_vm3, %v921_v35 }
 0x1dc   :  { %v730_v53 = vpop.f32.mrf.mxu1 }
 0x1dd   :  { %v1001_v57 = vadd.f32 %v730_v53, %v585_v54 }
 0x1de   :  { %v269_v56 = vpop.f32.mrf.mxu1 }
 0x1df   :  { %v1003_v58 = vadd.f32 %v585_v54, %v269_v56 }
 0x1e1   :  { %v1007_v59 = vpack.c.bf16 %v1001_v57, %v1003_v58 }
 0x1e3   :  { %731 = vmatprep.subr.bf16.mxu0 %v1007_v59 }
 0x1e4   :  { %732 = vmatpush3.bf16.msra.mxu0 %v1007_v59 }
 0x1e5   :  { %769 = vmatprep.subr.bf16.mxu0 %v921_v35 }
 0x1e7   :  { %734 = vmatmul.mubr.msk.bf16.vlgmr.msra.gmra.mxu0 %vm320_vm2, %v313_v52 }
 0x1e8   :  { %737 = vmatprep.mubr.msk.bf16.mxu0 %vm320_vm2, %v314_v55 }
 0x1ef   :  { %738 = vmatmul.mubr.msk.bf16.gmra.mxu0 %vm320_vm2, %v315_v60 }
 0x1f0   :  { %741 = vmatprep.mubr.msk.bf16.mxu0 %vm320_vm2, %v316_v61 }
 0x1f7   :  { %742 = vmatmul.mubr.msk.bf16.gmra.mxu0 %vm320_vm2, %v317_v62 }
 0x1f8   :  { %745 = vmatprep.mubr.msk.bf16.mxu0 %vm320_vm2, %v318_v63 }
 0x1ff   :  { %746 = vmatmul.mubr.msk.bf16.gmra.mxu0 %vm320_vm2, %v319_v0 }
 0x200   :  { %785 = vmatprep.mubr.msk.bf16.mxu0 %vm922_vm3, %v921_v35 }
 0x2a7   :  { %v735_v1 = vpop.f32.mrf.mxu0 }
 0x2a9   :  { %v379_v2 = vpop.f32.mrf.mxu0 }
 0x2ab   :  { %v736_v3 = vpop.f32.mrf.mxu0 }
 0x2ac   :  { %v443_v23 = vpack.c.bf16 %v736_v3, %v735_v1 }
 0x2ad   :  { %v382_v4 = vpop.f32.mrf.mxu0 }
 0x2ae   :  { %v442_v24 = vpack.c.bf16 %v382_v4, %v379_v2 }
 0x2af   :  { %v739_v5 = vpop.f32.mrf.mxu0 }
 0x2b1   :  { %v395_v6 = vpop.f32.mrf.mxu0 }
 0x2b3   :  { %v740_v7 = vpop.f32.mrf.mxu0 }
 0x2b4   :  { %v445_v21 = vpack.c.bf16 %v740_v7, %v739_v5 }
 0x2b5   :  { %v398_v8 = vpop.f32.mrf.mxu0 }
 0x2b6   :  { %v444_v22 = vpack.c.bf16 %v398_v8, %v395_v6 }
 0x2b7   :  { %v743_v9 = vpop.f32.mrf.mxu0 }
 0x2b9   :  { %v411_v10 = vpop.f32.mrf.mxu0 }
 0x2bb   :  { %v744_v11 = vpop.f32.mrf.mxu0 }
 0x2bc   :  { %v447_v19 = vpack.c.bf16 %v744_v11, %v743_v9 }
 0x2bd   :  { %v414_v12 = vpop.f32.mrf.mxu0 }
 0x2be   :  { %v446_v20 = vpack.c.bf16 %v414_v12, %v411_v10 }
 0x2bf   :  { %v747_v13 = vpop.f32.mrf.mxu0 }
 0x2c1   :  { %v427_v14 = vpop.f32.mrf.mxu0 }
 0x2c3   :  { %v748_v15 = vpop.f32.mrf.mxu0 }
 0x2c4   :  { %v449_v16 = vpack.c.bf16 %v748_v15, %v747_v13 }
 0x2c5   :  { %v430_v17 = vpop.f32.mrf.mxu0 }
 0x2c6   :  { %750 = vmatpush3.bf16.xpose.msra.mxu1 %v449_v16  ;;  %770 = vmatpush3.bf16.msra.mxu0 %v449_v16  ;;  %v448_v18 = vpack.c.bf16 %v430_v17, %v427_v14 }
 0x2c7   :  { %771 = vmatprep.subr.bf16.mxu0 %v921_v35  ;;  %751 = vmatprep.subr.bf16.mxu1 %v921_v35 }
 0x2ca   :  { %772 = vmatpush3.bf16.msra.mxu0 %v448_v18 }
 0x2cb   :  { %773 = vmatprep.subr.bf16.mxu0 %v921_v35 }
 0x2ce   :  { %752 = vmatpush3.bf16.xpose.msra.mxu1 %v448_v18  ;;  %774 = vmatpush3.bf16.msra.mxu0 %v447_v19 }
 0x2cf   :  { %775 = vmatprep.subr.bf16.mxu0 %v921_v35  ;;  %753 = vmatprep.subr.bf16.mxu1 %v921_v35 }
 0x2d2   :  { %776 = vmatpush3.bf16.msra.mxu0 %v446_v20 }
 0x2d3   :  { %777 = vmatprep.subr.bf16.mxu0 %v921_v35 }
 0x2d6   :  { %754 = vmatpush3.bf16.xpose.msra.mxu1 %v447_v19  ;;  %778 = vmatpush3.bf16.msra.mxu0 %v445_v21 }
 0x2d7   :  { %779 = vmatprep.subr.bf16.mxu0 %v921_v35  ;;  %755 = vmatprep.subr.bf16.mxu1 %v921_v35 }
 0x2da   :  { %780 = vmatpush3.bf16.msra.mxu0 %v444_v22 }
 0x2db   :  { %781 = vmatprep.subr.bf16.mxu0 %v921_v35 }
 0x2de   :  { %756 = vmatpush3.bf16.xpose.msra.mxu1 %v446_v20  ;;  %782 = vmatpush3.bf16.msra.mxu0 %v443_v23 }
 0x2df   :  { %783 = vmatprep.subr.bf16.mxu0 %v921_v35  ;;  %757 = vmatprep.subr.bf16.mxu1 %v921_v35 }
 0x2e2   :  { %784 = vmatpush3.bf16.msra.mxu0 %v442_v24 }
 0x2e6   :  { %758 = vmatpush3.bf16.xpose.msra.mxu1 %v445_v21 }
 0x2e7   :  { %759 = vmatprep.subr.bf16.mxu1 %v921_v35 }
 0x2ee   :  { %760 = vmatpush3.bf16.xpose.msra.mxu1 %v444_v22 }
 0x2ef   :  { %761 = vmatprep.subr.bf16.mxu1 %v921_v35 }
 0x2f6   :  { %762 = vmatpush3.bf16.xpose.msra.mxu1 %v443_v23 }
 0x2f7   :  { %763 = vmatprep.subr.bf16.mxu1 %v921_v35 }
 0x2fe   :  { %764 = vmatpush3.bf16.xpose.msra.mxu1 %v442_v24 }
 0x305   :  { %766 = vmatmul.mubr.bf16.vlgmr.msra.gmra.mxu1 %v1007_v59 }
 0x3c5   :  { %v484_v27 = vpop.f32.mrf.mxu1 }
 0x3c6   :  { %v491_v28 = vsel %vm292_vm4, %v484_v27, -1e+30 }
 0x3c7   :  { %493 = vmax.xlane.f32.xlu0 %v491_v28  ;;  %v767_v29 = vpop.f32.mrf.mxu1 }
 0x3c9   :  { %v487_v30 = vpop.f32.mrf.mxu1 }
 0x3ca   :  { %v492_v31 = vsel %vm293_vm5, %v487_v30, -1e+30 }
 0x3cb   :  { %495 = vmax.xlane.f32.xlu1 %v492_v31  ;;  %v768_v32 = vpop.f32.mrf.mxu1 }
 0x450   :  { %v494_v33 = vpop.xlane.xlu0 %493 }
 0x451   :  { %v497_v34 = vsub.f32 %v491_v28, %v494_v33 }
 0x453   :  { %v499_v39 = vmul.f32 1.442695, %v497_v34 }
 0x454   :  { %v496_v37 = vpop.xlane.xlu1 %495 }
 0x455   :  { %799 = vpow2.f32 %v499_v39  ;;  %v498_v40 = vsub.f32 %v492_v31, %v496_v37 }
 0x457   :  { %v501_v41 = vmul.f32 1.442695, %v498_v40 }
 0x459   :  { %801 = vpow2.f32 %v501_v41 }
 0x462   :  { %v800_v43 = vpop.eup %799 }
 0x463   :  { %v503_v44 = vmul.f32 %v800_v43, %v588_v42 }
 0x465   :  { %505 = vadd.xlane.f32.xlu1 %v503_v44 }
 0x466   :  { %v802_v46 = vpop.eup %801 }
 0x467   :  { %v504_v47 = vmul.f32 %v802_v46, %v589_v45 }
 0x469   :  { %507 = vadd.xlane.f32.xlu1 %v504_v47  ;;  %v509_v48 = vpack.c.bf16 %v504_v47, %v503_v44 }
 0x46b   :  { %786 = vmatmul.mubr.bf16.vlgmr.msra.gmra.mxu0 %v509_v48 }
 0x4ee   :  { %v506_v49 = vpop.xlane.xlu1 %505 }
 0x4ef   :  { %vm551_vm6 = vcmp.gt.f32.partialorder %v506_v49, 0.0 }
 0x4f0   :  { %v553_v51 = vsel %vm551_vm6, %v506_v49, 1.0 }
 0x4f1   :  { %803 = vrcp.f32 %v553_v51 }
 0x4f2   :  { %v508_v50 = vpop.xlane.xlu1 %507 }
 0x4f3   :  { %vm552_vm7 = vcmp.gt.f32.partialorder %v508_v50, 0.0 }
 0x4f4   :  { %v554_v36 = vsel %vm552_vm7, %v508_v50, 1.0 }
 0x4f5   :  { %805 = vrcp.f32 %v554_v36 }
 0x4fe   :  { %v804_v52 = vpop.eup %803 }
 0x4ff   :  { %v557_v54 = vsel %vm551_vm6, %v804_v52, 0.0 }
 0x502   :  { %v806_v55 = vpop.eup %805 }
 0x503   :  { %v558_v60 = vsel %vm552_vm7, %v806_v55, 0.0 }
 0x52b   :  { %v544_v53 = vpop.f32.mrf.mxu0 }
 0x52c   :  { %v559_v38 = vmul.f32 %v557_v54, %v544_v53 }
 0x52d   :  { %v787_v35 = vpop.f32.mrf.mxu0 }
 0x52e   :  { %v561_v56 = vadd.f32 %v559_v38, %v1003_v58 }
 0x52f   :  { %v547_v59 = vpop.f32.mrf.mxu0 }
 0x530   :  { %563 = vst [vmem:[#allocation10] sm:$0xff] %v561_v56  ;;  %v560_v61 = vmul.f32 %v558_v60, %v547_v59 }
 0x531   :  { %v788_v62 = vpop.f32.mrf.mxu0 }
 0x532   :  { %v562_v63 = vadd.f32 %v560_v61, %v1001_v57 }
 0x534   :  { %564 = vst [vmem:[#allocation10 + $0x8] sm:$0xff] %v562_v63 }
 0x535   :  { %898 = shalt.err (!%p895_p10)
}
 0x536   :  { %576 = dma.vmem_to_hbm [thread:$0]  %s571_s5, 256, %s1064_s6, [#allocation4], %s916_s24, %s916_s24, %s917_s25  }
 0x537   :  { %913 = dma.done.wait [#allocation4], 256  }
 0x538   :  { %914 = vsyncadd [#allocation4], 4294967040 }
 0x539   :  { %580 = vsyncpa [#allocation3], 1 }
 0x53a   :  { %581 = vsyncpa [#allocation6], 1 }
 0x53b   :  { %582 = vsyncpa [#allocation9], 1 }
 0x53c   :  { %583 = vsyncpa [#allocation4], 1 }

</bundles_post_ra>
